<compile_context>
chip_gen: v6e
topology: v6e:2x2x1
jax: 0.10.0
libtpu: 0.0.40
codegen_flags: <defaults>
</compile_context>

<pallas_src>
import jax
import jax.numpy as jnp
from jax.experimental import pallas as pl
from jax.experimental.pallas import tpu as pltpu


def _round_up(x, m):
    return ((x + m - 1) // m) * m


# ----------------------------------------------------------------------------
# Fused-gather kernel: tables resident in VMEM, gather done as one-hot matmul.
# ----------------------------------------------------------------------------
def _puremf_fused_kernel(u_idx_ref, i_idx_ref, ut_ref, it_ref, o_ref):
    # u_idx_ref, i_idx_ref : (1, TB) int32  — batch on lanes.
    # ut_ref               : (Dp, NUp)     — transposed user table (resident).
    # it_ref               : (Dp, NIp)     — transposed item table (resident).
    # o_ref                : (1, TB) f32   — lane-dense output tile.
    nup = ut_ref.shape[1]
    nip = it_ref.shape[1]
    tb = u_idx_ref.shape[1]
    tdt = ut_ref.dtype

    u_idx = u_idx_ref[...]                                   # (1, TB)
    i_idx = i_idx_ref[...]                                   # (1, TB)

    # One-hot selection matrices (VPU compare/select); the actual "gather" is
    # an MXU matmul, which keeps D on sublanes and batch on lanes.
    pu = (jax.lax.broadcasted_iota(jnp.int32, (nup, tb), 0) == u_idx).astype(tdt)
    pi = (jax.lax.broadcasted_iota(jnp.int32, (nip, tb), 0) == i_idx).astype(tdt)

    ue = jnp.dot(ut_ref[...], pu, preferred_element_type=jnp.float32)  # (Dp, TB)
    ie = jnp.dot(it_ref[...], pi, preferred_element_type=jnp.float32)  # (Dp, TB)

    scores = jnp.sum(ue * ie, axis=0, keepdims=True)         # XLU sublane reduce
    o_ref[...] = jax.nn.sigmoid(scores)                      # EUP


def _forward_fused(user_tbl, item_tbl, users, items, B, D, tb, stream_dtype):
    NU = user_tbl.shape[0]
    NI = item_tbl.shape[0]
    sbytes = jnp.dtype(stream_dtype).itemsize

    # Pad table dims: D -> multiple of 8 (sublanes), entity count -> multiple
    # of 128 (lanes).  Zero padding never gets selected (indices < NU/NI).
    dp = _round_up(D, 8)
    nup = _round_up(NU, 128)
    nip = _round_up(NI, 128)

    # Keep the two one-hot intermediates under ~2 MiB combined so VMEM stays
    # comfortable on every generation (v5e's 16 MiB default scoped limit).
    max_tb = max(128, (2 * 1024 * 1024) // max(1, (nup + nip) * sbytes))
    tb = max(128, (min(int(tb), max_tb) // 128) * 128)
    tb = min(tb, _round_up(B, 128))
    n_tiles = pl.cdiv(B, tb)
    Bp = n_tiles * tb

    if Bp != B:  # padded lanes use index 0 (valid) and are sliced off.
        users = jnp.pad(users, (0, Bp - B))
        items = jnp.pad(items, (0, Bp - B))
    u2 = users.reshape(1, Bp)
    i2 = items.reshape(1, Bp)

    ut_p = jnp.zeros((dp, nup), stream_dtype).at[:D, :NU].set(
        user_tbl.T.astype(stream_dtype))
    it_p = jnp.zeros((dp, nip), stream_dtype).at[:D, :NI].set(
        item_tbl.T.astype(stream_dtype))

    cost = pl.CostEstimate(
        flops=2 * Bp * dp * (nup + nip) + 2 * Bp * dp,
        transcendentals=Bp,
        bytes_accessed=2 * Bp * 4                        # index streams
        + (dp * nup + dp * nip) * sbytes                 # tables (read once)
        + Bp * 4,                                        # output
    )

    out2d = pl.pallas_call(
        _puremf_fused_kernel,
        out_shape=jax.ShapeDtypeStruct((1, Bp), jnp.float32),
        grid_spec=pltpu.PrefetchScalarGridSpec(
            num_scalar_prefetch=0,
            grid=(n_tiles,),
            in_specs=[
                pl.BlockSpec((1, tb), lambda b: (0, b)),     # user indices
                pl.BlockSpec((1, tb), lambda b: (0, b)),     # item indices
                pl.BlockSpec((dp, nup), lambda b: (0, 0)),   # user table (resident)
                pl.BlockSpec((dp, nip), lambda b: (0, 0)),   # item table (resident)
            ],
            out_specs=pl.BlockSpec((1, tb), lambda b: (0, b)),
        ),
        compiler_params=pltpu.CompilerParams(
            dimension_semantics=("parallel",),
        ),
        cost_estimate=cost,
    )(u2, i2, ut_p, it_p)
    return out2d[0, :B]


# ----------------------------------------------------------------------------
# Streaming kernel (fallback for huge tables): pre-gathered (D, B) streams.
# ----------------------------------------------------------------------------
def _puremf_stream_kernel(u_ref, i_ref, o_ref):
    # u_ref, i_ref: (D, TB) tiles — batch on lanes, D on sublanes.
    u = u_ref[...].astype(jnp.float32)
    i = i_ref[...].astype(jnp.float32)
    scores = jnp.sum(u * i, axis=0, keepdims=True)            # (1, TB)
    o_ref[...] = jax.nn.sigmoid(scores)


def _forward_stream(user_tbl, item_tbl, users, items, B, D, tb, stream_dtype):
    sbytes = jnp.dtype(stream_dtype).itemsize
    tb = max(128, (int(tb) // 128) * 128)
    tb = min(tb, _round_up(B, 128))
    n_tiles = pl.cdiv(B, tb)
    Bp = n_tiles * tb

    if Bp != B:
        users = jnp.pad(users, (0, Bp - B))
        items = jnp.pad(items, (0, Bp - B))

    # Cast tables to the stream dtype *before* the gather so the big (B, D)
    # intermediates are already half-width, then transpose so batch -> lanes.
    # TODO(synk): fuse this gather for huge-table/large-D cases with batched
    # per-row DMAs; at D=32 rows are 128 B so per-row DMAs would be
    # descriptor-overhead bound and XLA's gather is kept outside the kernel.
    ue_t = jnp.take(user_tbl.astype(stream_dtype), users, axis=0).T   # (D, Bp)
    ie_t = jnp.take(item_tbl.astype(stream_dtype), items, axis=0).T   # (D, Bp)

    cost = pl.CostEstimate(
        flops=2 * Bp * D,
        transcendentals=Bp,
        bytes_accessed=2 * Bp * D * sbytes + Bp * 4,
    )

    out2d = pl.pallas_call(
        _puremf_stream_kernel,
        out_shape=jax.ShapeDtypeStruct((1, Bp), jnp.float32),
        grid_spec=pltpu.PrefetchScalarGridSpec(
            num_scalar_prefetch=0,
            grid=(n_tiles,),
            in_specs=[
                pl.BlockSpec((D, tb), lambda b: (0, b)),
                pl.BlockSpec((D, tb), lambda b: (0, b)),
            ],
            out_specs=pl.BlockSpec((1, tb), lambda b: (0, b)),
        ),
        compiler_params=pltpu.CompilerParams(
            dimension_semantics=("parallel",),
        ),
        cost_estimate=cost,
    )(ue_t, ie_t)
    return out2d[0, :B]


# ----------------------------------------------------------------------------
# Public wrapper == PureMF.forward(users, items)
# ----------------------------------------------------------------------------
def puremf_forward(user_emb_table, item_emb_table, users, items, *,
                   tb=8192, stream_dtype=jnp.bfloat16,
                   fused_table_rows_max=1024):
    """Equivalent of PureMF.forward(users, items). Returns f32 (B,).

    tb: batch tile (lanes). 8192 default; on v7x 16384-32768 is also fine.
    stream_dtype: dtype the embeddings are streamed/held in (bf16 default,
        f32 accumulation in-kernel; pass jnp.float32 for exact f32 math).
    fused_table_rows_max: if both tables have at most this many rows they are
        kept VMEM-resident and the gather is fused into the kernel.
    """
    users = users.astype(jnp.int32)
    items = items.astype(jnp.int32)
    B = users.shape[0]
    NU, D = user_emb_table.shape
    NI, D2 = item_emb_table.shape
    assert D == D2, "user/item latent dims must match"
    if stream_dtype is None:
        stream_dtype = user_emb_table.dtype
    stream_dtype = jnp.dtype(stream_dtype)

    if NU <= fused_table_rows_max and NI <= fused_table_rows_max:
        return _forward_fused(user_emb_table, item_emb_table, users, items,
                              B, D, tb, stream_dtype)
    return _forward_stream(user_emb_table, item_emb_table, users, items,
                           B, D, tb, stream_dtype)


def puremf_forward_ref(user_emb_table, item_emb_table, users, items):
    """Pure-JAX reference of the PyTorch forward (f32)."""
    ue = jnp.take(user_emb_table, users.astype(jnp.int32), axis=0)
    ie = jnp.take(item_emb_table, items.astype(jnp.int32), axis=0)
    return jax.nn.sigmoid(
        jnp.sum(ue.astype(jnp.float32) * ie.astype(jnp.float32), axis=1)
    )


if __name__ == "__main__":
    # Small deterministic configuration consistent with PureMF.__init__:
    #   num_users, num_items entities; latent_dim_rec = D; N(0,1) init.
    num_users, num_items, latent_dim = 64, 96, 32
    batch = 300  # not a multiple of 128 -> exercises padding

    key = jax.random.PRNGKey(0)
    k_user, k_item, k_u_idx, k_i_idx = jax.random.split(key, 4)

    embedding_user = jax.random.normal(k_user, (num_users, latent_dim), jnp.float32)
    embedding_item = jax.random.normal(k_item, (num_items, latent_dim), jnp.float32)
    users = jax.random.randint(k_u_idx, (batch,), 0, num_users, jnp.int32)
    items = jax.random.randint(k_i_idx, (batch,), 0, num_items, jnp.int32)

    ref = puremf_forward_ref(embedding_user, embedding_item, users, items)

    # 1) Fused VMEM-resident path, default bf16 streams, default (auto) tile.
    out_fused = puremf_forward(embedding_user, embedding_item, users, items)
    out_fused = jax.block_until_ready(out_fused)
    assert out_fused.shape == (batch,)
    assert jnp.allclose(out_fused, ref, atol=5e-2)

    # 2) Fused path, exact f32 math, small tile -> multi-step grid.
    out_fused_f32 = puremf_forward(embedding_user, embedding_item, users, items,
                                   tb=128, stream_dtype=jnp.float32)
    out_fused_f32 = jax.block_until_ready(out_fused_f32)
    assert jnp.allclose(out_fused_f32, ref, atol=1e-4, rtol=1e-4)

    # 3) Streaming fallback path (forced), bf16 streams, multi-step grid.
    out_stream = puremf_forward(embedding_user, embedding_item, users, items,
                                tb=128, fused_table_rows_max=0)
    out_stream = jax.block_until_ready(out_stream)
    assert jnp.allclose(out_stream, ref, atol=5e-2)

    # 4) Streaming fallback, exact f32 streams.
    out_stream_f32 = puremf_forward(embedding_user, embedding_item, users, items,
                                    tb=128, stream_dtype=jnp.float32,
                                    fused_table_rows_max=0)
    out_stream_f32 = jax.block_until_ready(out_stream_f32)
    assert jnp.allclose(out_stream_f32, ref, atol=1e-4, rtol=1e-4)

    print("KERNEL_OK")
</pallas_src>

<mosaic_0001>
module attributes {stable_mosaic.version = 11 : i64} {
  func.func @_puremf_fused_kernel(%arg0: i32, %arg1: memref<1x384xi32, #tpu.memory_space<vmem>>, %arg2: memref<1x384xi32, #tpu.memory_space<vmem>>, %arg3: memref<32x128xbf16, #tpu.memory_space<vmem>>, %arg4: memref<32x128xbf16, #tpu.memory_space<vmem>>, %arg5: memref<1x384xf32, #tpu.memory_space<vmem>>) attributes {dimension_semantics = [#tpu.dimension_semantics<parallel>], iteration_bounds = array<i64: 1>, scalar_prefetch = 0 : i64, scratch_operands = 0 : i64, tpu.core_type = #tpu.core_type<tc>, window_params = [{transform_indices = @transform_0, window_bounds = array<i64: 1, 384>}, {transform_indices = @transform_1, window_bounds = array<i64: 1, 384>}, {pipeline_mode = #tpu.pipeline_mode<synchronous>, transform_indices = @transform_2, window_bounds = array<i64: 32, 128>}, {pipeline_mode = #tpu.pipeline_mode<synchronous>, transform_indices = @transform_3, window_bounds = array<i64: 32, 128>}, {transform_indices = @transform_4, window_bounds = array<i64: 1, 384>}]} {
    %c0 = arith.constant 0 : index
    %c0_0 = arith.constant 0 : index
    %0 = vector.load %arg1[%c0, %c0_0] : memref<1x384xi32, #tpu.memory_space<vmem>>, vector<1x384xi32>
    %c0_1 = arith.constant 0 : index
    %c0_2 = arith.constant 0 : index
    %1 = vector.load %arg2[%c0_1, %c0_2] : memref<1x384xi32, #tpu.memory_space<vmem>>, vector<1x384xi32>
    %2 = tpu.iota {dimensions = array<i32: 0>} : vector<128x384xi32>
    %3 = vector.broadcast %0 : vector<1x384xi32> to vector<128x384xi32>
    %4 = arith.cmpi eq, %2, %3 : vector<128x384xi32>
    %5 = arith.extui %4 : vector<128x384xi1> to vector<128x384xi32>
    %6 = arith.sitofp %5 : vector<128x384xi32> to vector<128x384xf32>
    %7 = arith.truncf %6 : vector<128x384xf32> to vector<128x384xbf16>
    %8 = tpu.iota {dimensions = array<i32: 0>} : vector<128x384xi32>
    %9 = vector.broadcast %1 : vector<1x384xi32> to vector<128x384xi32>
    %10 = arith.cmpi eq, %8, %9 : vector<128x384xi32>
    %11 = arith.extui %10 : vector<128x384xi1> to vector<128x384xi32>
    %12 = arith.sitofp %11 : vector<128x384xi32> to vector<128x384xf32>
    %13 = arith.truncf %12 : vector<128x384xf32> to vector<128x384xbf16>
    %c0_3 = arith.constant 0 : index
    %c0_4 = arith.constant 0 : index
    %14 = vector.load %arg3[%c0_3, %c0_4] : memref<32x128xbf16, #tpu.memory_space<vmem>>, vector<32x128xbf16>
    %cst = arith.constant dense<0.000000e+00> : vector<32x384xf32>
    %15 = tpu.matmul %14, %7, %cst {dimension_numbers = #tpu.dot_dimension_numbers<[1], [0], [0], [1], [0, 0, 1, 1], [], []>} : vector<32x128xbf16>, vector<128x384xbf16>, vector<32x384xf32> -> vector<32x384xf32>
    %c0_5 = arith.constant 0 : index
    %c0_6 = arith.constant 0 : index
    %16 = vector.load %arg4[%c0_5, %c0_6] : memref<32x128xbf16, #tpu.memory_space<vmem>>, vector<32x128xbf16>
    %cst_7 = arith.constant dense<0.000000e+00> : vector<32x384xf32>
    %17 = tpu.matmul %16, %13, %cst_7 {dimension_numbers = #tpu.dot_dimension_numbers<[1], [0], [0], [1], [0, 0, 1, 1], [], []>} : vector<32x128xbf16>, vector<128x384xbf16>, vector<32x384xf32> -> vector<32x384xf32>
    %18 = arith.mulf %15, %17 : vector<32x384xf32>
    %cst_8 = arith.constant dense<0.000000e+00> : vector<384xf32>
    %19 = vector.multi_reduction <add>, %18, %cst_8 [0] : vector<32x384xf32> to vector<384xf32>
    %20 = vector.shape_cast %19 : vector<384xf32> to vector<1x384xf32>
    %21 = arith.negf %20 : vector<1x384xf32>
    %22 = math.exp %21 : vector<1x384xf32>
    %cst_9 = arith.constant 1.000000e+00 : f32
    %23 = vector.broadcast %cst_9 : f32 to vector<1x384xf32>
    %24 = arith.addf %23, %22 : vector<1x384xf32>
    %25 = arith.divf %23, %24 : vector<1x384xf32>
    %c0_10 = arith.constant 0 : index
    %c0_11 = arith.constant 0 : index
    %26 = vector.load %arg5[%c0_10, %c0_11] : memref<1x384xf32, #tpu.memory_space<vmem>>, vector<1x384xf32>
    tpu.vector_store %arg5[%c0_10, %c0_11], %25 {strides = array<i32>} : memref<1x384xf32, #tpu.memory_space<vmem>>, vector<1x384xf32>,
    return
  }
  func.func @transform_0(%arg0: i32) -> (i32, i32) {
    %c0_i32 = arith.constant 0 : i32
    %c0_i32_0 = arith.constant 0 : i32
    return %c0_i32, %arg0 : i32, i32
  }
  func.func @transform_1(%arg0: i32) -> (i32, i32) {
    %c0_i32 = arith.constant 0 : i32
    %c0_i32_0 = arith.constant 0 : i32
    return %c0_i32, %arg0 : i32, i32
  }
  func.func @transform_2(%arg0: i32) -> (i32, i32) {
    %c0_i32 = arith.constant 0 : i32
    %c0_i32_0 = arith.constant 0 : i32
    %c0_i32_1 = arith.constant 0 : i32
    return %c0_i32, %c0_i32_0 : i32, i32
  }
  func.func @transform_3(%arg0: i32) -> (i32, i32) {
    %c0_i32 = arith.constant 0 : i32
    %c0_i32_0 = arith.constant 0 : i32
    %c0_i32_1 = arith.constant 0 : i32
    return %c0_i32, %c0_i32_0 : i32, i32
  }
  func.func @transform_4(%arg0: i32) -> (i32, i32) {
    %c0_i32 = arith.constant 0 : i32
    %c0_i32_0 = arith.constant 0 : i32
    return %c0_i32, %arg0 : i32, i32
  }
}

</mosaic_0001>

<bundles_post_ra>
// kernel: tpu_custom_call.1
= control target key start
LH: loop header
LB: loop body
LE: loop exit
PB: predicated region body
PF: predicated region fallthrough
CT: control target
= control target key end

     0   :  { %9 = vsyncpa [#allocation3], 0  ;;  %s1678_s0 = inlined_call_operand.hbm [shape: s32[1,384], index: 0, kind: input, shape index: {}]   ;;  %s1679_s1 = inlined_call_operand.hbm [shape: s32[1,384], index: 1, kind: input, shape index: {}]   ;;  %s1680_s2 = inlined_call_operand.hbm [shape: bf16[32,128], index: 2, kind: input, shape index: {}]   ;;  %s1681_s3 = inlined_call_operand.hbm [shape: bf16[32,128], index: 3, kind: input, shape index: {}]   ;;  %s1682_s4 = inlined_call_operand.hbm [shape: f32[1,384], index: 4, kind: output, shape index: {}]  }
   0x1   :  { %10 = vsyncpa [#allocation6], 0 }
   0x2   :  { %11 = vsyncpa [#allocation9], 0 }
   0x3   :  { %12 = vsyncpa [#allocation4], 0  ;;  %s1184_s15 = smov [#allocation5]   ;;  %s1185_s17 = smov [#allocation2]  }
   0x4   :  { %s29_s16 = sshll.u32 %s1184_s15, 4  ;;  %s19_s18 = sshll.u32 %s1185_s17, 4  ;;  %s30_s16 = int_to_ptr.vmem [resolvable:$true] %s29_s16  ;;  %s20_s18 = int_to_ptr.vmem [resolvable:$true] %s19_s18 }
   0x5   :  { %s1084_s19 = scalar_lea.vmem %s30_s16, 48  ;;  %s1088_s20 = scalar_lea.vmem %s30_s16, 64 }
   0x6   :  { %p1085_p0 = scmp.ne.s32.totalorder %s30_s16, %s1084_s19  ;;  %p1089_p1 = scmp.lt.s32.totalorder %s30_s16, %s30_s16 }
   0x7   :  { %p1090_p2 = scmp.lt.s32.totalorder %s1088_s20, %s1084_s19 }
   0x9   :  { %p1091_p3 = por %p1090_p2, %p1089_p1 }
   0xb   :  { %p1092_p4 = pnand %p1091_p3, %p1085_p0 }
   0xd   :  { %1095 = shalt.err (!%p1092_p4)
}
   0xe   :  { %32 = dma.hbm_to_vmem [thread:$0]  %s1679_s1, 48, %s30_s16, [#allocation6]  }
   0xf   :  { %s1104_s23 = scalar_lea.vmem %s20_s18, 48  ;;  %s1108_s24 = scalar_lea.vmem %s20_s18, 64 }
  0x10   :  { %p1105_p5 = scmp.ne.s32.totalorder %s20_s18, %s1104_s23  ;;  %p1109_p6 = scmp.lt.s32.totalorder %s20_s18, %s20_s18 }
  0x11   :  { %p1110_p7 = scmp.lt.s32.totalorder %s1108_s24, %s1104_s23 }
  0x13   :  { %p1111_p8 = por %p1110_p7, %p1109_p6 }
  0x15   :  { %p1112_p9 = pnand %p1111_p8, %p1105_p5 }
  0x17   :  { %1115 = shalt.err (!%p1112_p9)
}
  0x18   :  { %22 = dma.hbm_to_vmem [thread:$0]  %s1678_s0, 48, %s20_s18, [#allocation3]  }
  0x19   :  { %s1186_s27 = smov [#allocation7]  }
  0x1a   :  { %s38_s28 = sshll.u32 %s1186_s27, 4  ;;  %s39_s28 = int_to_ptr.vmem [resolvable:$true] %s38_s28 }
  0x1b   :  { %s1124_s29 = scalar_lea.vmem %s39_s28, 256  ;;  %p1129_p11 = scmp.lt.s32.totalorder %s39_s28, %s39_s28 }
  0x1c   :  { %p1125_p10 = scmp.ne.s32.totalorder %s39_s28, %s1124_s29  ;;  %p1130_p12 = scmp.lt.s32.totalorder %s1124_s29, %s1124_s29 }
  0x1e   :  { %p1131_p13 = por %p1130_p12, %p1129_p11 }
  0x20   :  { %p1132_p0 = pnand %p1131_p13, %p1125_p10 }
  0x22   :  { %1135 = shalt.err (!%p1132_p0)
}
  0x23   :  { %s1187_s1 = smov 64   ;;  %s1188_s30 = smov 4  }
  0x24   :  { %44 = dma.hbm_to_vmem [thread:$0]  %s1680_s2, 256, %s39_s28, [#allocation6], %s1187_s1, %s1187_s1, %s1188_s30  }
  0x25   :  { %s1189_s7 = smov [#allocation8]  }
  0x26   :  { %s50_s8 = sshll.u32 %s1189_s7, 4  ;;  %s51_s8 = int_to_ptr.vmem [resolvable:$true] %s50_s8 }
  0x27   :  { %s1144_s0 = scalar_lea.vmem %s51_s8, 256  ;;  %p1149_p2 = scmp.lt.s32.totalorder %s51_s8, %s51_s8 }
  0x28   :  { %p1145_p1 = scmp.ne.s32.totalorder %s51_s8, %s1144_s0  ;;  %p1150_p3 = scmp.lt.s32.totalorder %s1144_s0, %s1144_s0 }
  0x2a   :  { %p1151_p4 = por %p1150_p3, %p1149_p2 }
  0x2c   :  { %p1152_p5 = pnand %p1151_p4, %p1145_p1 }
  0x2e   :  { %1155 = shalt.err (!%p1152_p5)
}
  0x2f   :  { %56 = dma.hbm_to_vmem [thread:$0]  %s1681_s3, 256, %s51_s8, [#allocation9], %s1187_s1, %s1187_s1, %s1188_s30  }
  0x30   :  { %1176 = dma.done.wait [#allocation3], 48  }
  0x31   :  { %1177 = vsyncadd [#allocation3], 4294967248 }
  0x32   :  { %1178 = dma.done.wait [#allocation6], 304  }
  0x33   :  { %1179 = vsyncadd [#allocation6], 4294966992 }
  0x34   :  { %1180 = dma.done.wait [#allocation9], 256  }
  0x35   :  { %1181 = vsyncadd [#allocation9], 4294967040  ;;  %v72_v0 = vlaneseq  ;;  %v1190_v1 = vmov 0   ;;  %v70_v8 = vld [vmem:[#allocation2] sm:$0x7]  ;;  %v1262_v14 = vld [vmem:[#allocation7] sm:$0xff]  }
  0x36   :  { %497 = vmatprep.mubr.bf16.mxu0 %v1190_v1  ;;  %1026 = vmatprep.mubr.bf16.mxu1 %v1262_v14  ;;  %v1191_v17 = vmov 1.0|1.0   ;;  %v71_v31 = vld [vmem:[#allocation5] sm:$0x7]  ;;  %v1061_v38 = vld [vmem:[#allocation7 + $0x8] sm:$0xff]   ;;  %v1529_v40 = vld [vmem:[#allocation8] sm:$0xff]  }
  0x37   :  { %v1233_v2 = vshrl.u32 %v72_v0, 7  ;;  %v1063_v45 = vld [vmem:[#allocation8 + $0x8] sm:$0xff]   ;;  %s1193_s2 = smov [#allocation10]  }
  0x38   :  { %s780_s3 = sshll.u32 %s1193_s2, 4  ;;  %s781_s3 = int_to_ptr.vmem [resolvable:$true] %s780_s3 }
  0x39   :  { %v95_v3 = vsub.s32 1, %v1233_v2  ;;  %v99_v4 = vsub.s32 2, %v1233_v2  ;;  %v91_v5 = vsub.s32 0, %v1233_v2  ;;  %v1239_v6 = vadd.s32 112, %v1233_v2  ;;  %s1156_s11 = scalar_lea.vmem %s781_s3, 48  ;;  %s1160_s12 = scalar_lea.vmem %s781_s3, 64 }
  0x3a   :  { %v1242_v7 = vadd.s32 120, %v1233_v2  ;;  %v1245_v9 = vadd.s32 96, %v1233_v2  ;;  %v1248_v10 = vadd.s32 104, %v1233_v2  ;;  %v1265_v15 = vadd.s32 80, %v1233_v2  ;;  %p1157_p6 = scmp.ne.s32.totalorder %s781_s3, %s1156_s11  ;;  %p1161_p7 = scmp.lt.s32.totalorder %s781_s3, %s781_s3 }
  0x3b   :  { %v1252_v11 = vrot.slane %v70_v8, %v95_v3  ;;  %v1256_v12 = vrot.slane %v70_v8, %v99_v4  ;;  %v1260_v13 = vrot.slane %v70_v8, %v91_v5  ;;  %v1268_v16 = vadd.s32 88, %v1233_v2  ;;  %p1162_p8 = scmp.lt.s32.totalorder %s1160_s12, %s1156_s11 }
  0x3c   :  { %v1298_v18 = vadd.s32 64, %v1233_v2  ;;  %v1301_v19 = vadd.s32 72, %v1233_v2  ;;  %v1323_v20 = vadd.s32 48, %v1233_v2  ;;  %v1326_v21 = vadd.s32 56, %v1233_v2 }
  0x3d   :  { %vm144_vm0 = vcmp.eq.s32.totalorder %v1239_v6, %v1252_v11  ;;  %vm147_vm1 = vcmp.eq.s32.totalorder %v1242_v7, %v1252_v11  ;;  %vm145_vm2 = vcmp.eq.s32.totalorder %v1239_v6, %v1256_v12  ;;  %vm148_vm3 = vcmp.eq.s32.totalorder %v1242_v7, %v1256_v12  ;;  %p1163_p9 = por %p1162_p8, %p1161_p7 }
  0x3e   :  { %vm889_vm4 = vmpackc.low %vm147_vm1, %vm144_vm0  ;;  %vm143_vm5 = vcmp.eq.s32.totalorder %v1239_v6, %v1260_v13  ;;  %vm146_vm6 = vcmp.eq.s32.totalorder %v1242_v7, %v1260_v13  ;;  %vm138_vm7 = vcmp.eq.s32.totalorder %v1245_v9, %v1252_v11  ;;  %vm141_vm8 = vcmp.eq.s32.totalorder %v1248_v10, %v1252_v11 }
  0x3f   :  { %890 = vmatprep.subr.msk.bf16.mxu0 %vm889_vm4, %v1191_v17  ;;  %vm921_vm9 = vmpackc.low %vm148_vm3, %vm145_vm2  ;;  %vm139_vm10 = vcmp.eq.s32.totalorder %v1245_v9, %v1256_v12  ;;  %vm142_vm11 = vcmp.eq.s32.totalorder %v1248_v10, %v1256_v12  ;;  %vm137_vm13 = vcmp.eq.s32.totalorder %v1245_v9, %v1260_v13  ;;  %vm140_vm14 = vcmp.eq.s32.totalorder %v1248_v10, %v1260_v13  ;;  %p1164_p10 = pnand %p1163_p9, %p1157_p6 }
  0x40   :  { %1010 = vmatprep.subr.msk.bf16.mxu1 %vm921_vm9, %v1191_v17  ;;  %vm891_vm12 = vmpackc.low %vm146_vm6, %vm143_vm5  ;;  %vm132_vm0 = vcmp.eq.s32.totalorder %v1265_v15, %v1252_v11  ;;  %vm135_vm1 = vcmp.eq.s32.totalorder %v1268_v16, %v1252_v11  ;;  %vm133_vm3 = vcmp.eq.s32.totalorder %v1265_v15, %v1256_v12  ;;  %vm136_vm4 = vcmp.eq.s32.totalorder %v1268_v16, %v1256_v12 }
  0x41   :  { %892 = vmatpush1.bf16.msk.msra.mxu0 %vm891_vm12, %v1191_v17  ;;  %1011 = vmatpush3.bf16.msk.msra.mxu1 %vm921_vm9, %v1191_v17  ;;  %vm893_vm15 = vmpackc.low %vm141_vm8, %vm138_vm7  ;;  %vm131_vm6 = vcmp.eq.s32.totalorder %v1265_v15, %v1260_v13  ;;  %vm134_vm7 = vcmp.eq.s32.totalorder %v1268_v16, %v1260_v13  ;;  %vm126_vm9 = vcmp.eq.s32.totalorder %v1298_v18, %v1252_v11  ;;  %v1355_v23 = vadd.s32 32, %v1233_v2 }
  0x42   :  { %894 = vmatprep.subr.msk.bf16.mxu0 %vm893_vm15, %v1191_v17  ;;  %vm923_vm2 = vmpackc.low %vm142_vm11, %vm139_vm10  ;;  %vm129_vm10 = vcmp.eq.s32.totalorder %v1301_v19, %v1252_v11  ;;  %vm127_vm12 = vcmp.eq.s32.totalorder %v1298_v18, %v1256_v12  ;;  %vm125_vm15 = vcmp.eq.s32.totalorder %v1298_v18, %v1260_v13  ;;  %v1358_v24 = vadd.s32 40, %v1233_v2 }
  0x43   :  { %1012 = vmatprep.subr.msk.bf16.mxu1 %vm923_vm2, %v1191_v17  ;;  %vm895_vm5 = vmpackc.low %vm140_vm14, %vm137_vm13  ;;  %vm130_vm13 = vcmp.eq.s32.totalorder %v1301_v19, %v1256_v12  ;;  %v1389_v27 = vadd.s32 16, %v1233_v2  ;;  %v1392_v28 = vadd.s32 24, %v1233_v2  ;;  %v1419_v30 = vadd.s32 8, %v1233_v2 }
  0x44   :  { %vm897_vm8 = vmpackc.low %vm135_vm1, %vm132_vm0  ;;  %vm128_vm0 = vcmp.eq.s32.totalorder %v1301_v19, %v1260_v13  ;;  %v1447_v33 = vrot.slane %v71_v31, %v95_v3  ;;  %v1455_v34 = vrot.slane %v71_v31, %v99_v4  ;;  %v1471_v35 = vrot.slane %v71_v31, %v91_v5 }
  0x45   :  { %896 = vmatpush1.bf16.msk.msra.mxu0 %vm895_vm5, %v1191_v17  ;;  %1013 = vmatpush3.bf16.msk.msra.mxu1 %vm923_vm2, %v1191_v17  ;;  %vm1334_vm11 = vmpackc.low %vm136_vm4, %vm133_vm3  ;;  %vm120_vm2 = vcmp.eq.s32.totalorder %v1323_v20, %v1252_v11  ;;  %vm123_vm3 = vcmp.eq.s32.totalorder %v1326_v21, %v1252_v11  ;;  %vm121_vm5 = vcmp.eq.s32.totalorder %v1323_v20, %v1256_v12 }
  0x46   :  { %898 = vmatprep.subr.msk.bf16.mxu0 %vm897_vm8, %v1191_v17  ;;  %1014 = vmatprep.subr.msk.bf16.mxu1 %vm1334_vm11, %v1191_v17  ;;  %vm899_vm14 = vmpackc.low %vm134_vm7, %vm131_vm6  ;;  %vm124_vm6 = vcmp.eq.s32.totalorder %v1326_v21, %v1256_v12 }
  0x47   :  { %vm901_vm1 = vmpackc.low %vm129_vm10, %vm126_vm9  ;;  %vm119_vm9 = vcmp.eq.s32.totalorder %v1323_v20, %v1260_v13  ;;  %vm122_vm10 = vcmp.eq.s32.totalorder %v1326_v21, %v1260_v13 }
  0x48   :  { %vm1360_vm4 = vmpackc.low %vm130_vm13, %vm127_vm12  ;;  %vm117_vm13 = vcmp.eq.s32.totalorder %v1358_v24, %v1252_v11 }
  0x49   :  { %900 = vmatpush1.bf16.msk.msra.mxu0 %vm899_vm14, %v1191_v17  ;;  %1015 = vmatpush3.bf16.msk.msra.mxu1 %vm1334_vm11, %v1191_v17  ;;  %vm903_vm7 = vmpackc.low %vm128_vm0, %vm125_vm15  ;;  %vm114_vm11 = vcmp.eq.s32.totalorder %v1355_v23, %v1252_v11  ;;  %vm115_vm14 = vcmp.eq.s32.totalorder %v1355_v23, %v1256_v12  ;;  %vm118_vm15 = vcmp.eq.s32.totalorder %v1358_v24, %v1256_v12 }
  0x4a   :  { %902 = vmatprep.subr.msk.bf16.mxu0 %vm901_vm1, %v1191_v17  ;;  %1016 = vmatprep.subr.msk.bf16.mxu1 %vm1360_vm4, %v1191_v17  ;;  %vm905_vm8 = vmpackc.low %vm123_vm3, %vm120_vm2  ;;  %vm113_vm2 = vcmp.eq.s32.totalorder %v1355_v23, %v1260_v13  ;;  %vm116_vm3 = vcmp.eq.s32.totalorder %v1358_v24, %v1260_v13 }
  0x4b   :  { %vm1380_vm12 = vmpackc.low %vm124_vm6, %vm121_vm5  ;;  %vm111_vm6 = vcmp.eq.s32.totalorder %v1392_v28, %v1252_v11 }
  0x4c   :  { %vm907_vm0 = vmpackc.low %vm122_vm10, %vm119_vm9 }
  0x4d   :  { %904 = vmatpush1.bf16.msk.msra.mxu0 %vm903_vm7, %v1191_v17  ;;  %1017 = vmatpush3.bf16.msk.msra.mxu1 %vm1360_vm4, %v1191_v17  ;;  %vm909_vm1 = vmpackc.low %vm117_vm13, %vm114_vm11  ;;  %vm108_vm4 = vcmp.eq.s32.totalorder %v1389_v27, %v1252_v11  ;;  %vm109_vm7 = vcmp.eq.s32.totalorder %v1389_v27, %v1256_v12  ;;  %vm107_vm11 = vcmp.eq.s32.totalorder %v1389_v27, %v1260_v13 }
  0x4e   :  { %906 = vmatprep.subr.msk.bf16.mxu0 %vm905_vm8, %v1191_v17  ;;  %1018 = vmatprep.subr.msk.bf16.mxu1 %vm1380_vm12, %v1191_v17  ;;  %vm1410_vm5 = vmpackc.low %vm118_vm15, %vm115_vm14  ;;  %vm112_vm8 = vcmp.eq.s32.totalorder %v1392_v28, %v1256_v12  ;;  %vm110_vm13 = vcmp.eq.s32.totalorder %v1392_v28, %v1260_v13  ;;  %vm105_vm15 = vcmp.eq.s32.totalorder %v1419_v30, %v1252_v11 }
  0x4f   :  { %vm911_vm9 = vmpackc.low %vm116_vm3, %vm113_vm2 }
  0x50   :  { %vm913_vm10 = vmpackc.low %vm111_vm6, %vm108_vm4  ;;  %vm101_vm4 = vcmp.eq.s32.totalorder %v1233_v2, %v1260_v13  ;;  %vm104_vm6 = vcmp.eq.s32.totalorder %v1419_v30, %v1260_v13 }
  0x51   :  { %908 = vmatpush1.bf16.msk.msra.mxu0 %vm907_vm0, %v1191_v17  ;;  %1019 = vmatpush3.bf16.msk.msra.mxu1 %vm1380_vm12, %v1191_v17  ;;  %vm1437_vm14 = vmpackc.low %vm112_vm8, %vm109_vm7  ;;  %vm102_vm12 = vcmp.eq.s32.totalorder %v1233_v2, %v1252_v11  ;;  %vm103_vm0 = vcmp.eq.s32.totalorder %v1233_v2, %v1256_v12  ;;  %vm327_vm8 = vcmp.eq.s32.totalorder %v1242_v7, %v1447_v33 }
  0x52   :  { %910 = vmatprep.subr.msk.bf16.mxu0 %vm909_vm1, %v1191_v17  ;;  %1020 = vmatprep.subr.msk.bf16.mxu1 %vm1410_vm5, %v1191_v17  ;;  %vm106_vm1 = vcmp.eq.s32.totalorder %v1419_v30, %v1256_v12  ;;  %vm915_vm2 = vmpackc.low %vm110_vm13, %vm107_vm11 }
  0x53   :  { %vm917_vm3 = vmpackc.low %vm105_vm15, %vm102_vm12  ;;  %vm323_vm12 = vcmp.eq.s32.totalorder %v1239_v6, %v1471_v35  ;;  %vm326_vm15 = vcmp.eq.s32.totalorder %v1242_v7, %v1471_v35 }
  0x54   :  { %vm1473_vm7 = vmpackc.low %vm106_vm1, %vm103_vm0  ;;  %vm321_vm1 = vcmp.eq.s32.totalorder %v1248_v10, %v1447_v33 }
  0x55   :  { %912 = vmatpush1.bf16.msk.msra.mxu0 %vm911_vm9, %v1191_v17  ;;  %1021 = vmatpush3.bf16.msk.msra.mxu1 %vm1410_vm5, %v1191_v17  ;;  %vm324_vm5 = vcmp.eq.s32.totalorder %v1239_v6, %v1447_v33  ;;  %vm325_vm9 = vcmp.eq.s32.totalorder %v1239_v6, %v1455_v34  ;;  %vm919_vm11 = vmpackc.low %vm104_vm6, %vm101_vm4 }
  0x56   :  { %914 = vmatprep.subr.msk.bf16.mxu0 %vm913_vm10, %v1191_v17  ;;  %1022 = vmatprep.subr.msk.bf16.mxu1 %vm1437_vm14, %v1191_v17  ;;  %vm328_vm10 = vcmp.eq.s32.totalorder %v1242_v7, %v1455_v34  ;;  %vm939_vm13 = vmpackc.low %vm327_vm8, %vm324_vm5  ;;  %vm317_vm5 = vcmp.eq.s32.totalorder %v1245_v9, %v1471_v35  ;;  %vm320_vm8 = vcmp.eq.s32.totalorder %v1248_v10, %v1471_v35 }
  0x57   :  { %vm1497_vm0 = vmpackc.low %vm328_vm10, %vm325_vm9  ;;  %vm315_vm10 = vcmp.eq.s32.totalorder %v1268_v16, %v1447_v33 }
  0x58   :  { %vm941_vm4 = vmpackc.low %vm326_vm15, %vm323_vm12 }
  0x59   :  { %916 = vmatpush1.bf16.msk.msra.mxu0 %vm915_vm2, %v1191_v17  ;;  %1023 = vmatpush3.bf16.msk.msra.mxu1 %vm1437_vm14, %v1191_v17  ;;  %vm318_vm14 = vcmp.eq.s32.totalorder %v1245_v9, %v1447_v33  ;;  %vm319_vm2 = vcmp.eq.s32.totalorder %v1245_v9, %v1455_v34  ;;  %vm945_vm12 = vmpackc.low %vm320_vm8, %vm317_vm5 }
  0x5a   :  { %918 = vmatprep.subr.msk.bf16.mxu0 %vm917_vm3, %v1191_v17  ;;  %1024 = vmatprep.subr.msk.bf16.mxu1 %vm1473_vm7, %v1191_v17  ;;  %vm322_vm3 = vcmp.eq.s32.totalorder %v1248_v10, %v1455_v34  ;;  %vm943_vm6 = vmpackc.low %vm321_vm1, %vm318_vm14  ;;  %vm311_vm14 = vcmp.eq.s32.totalorder %v1265_v15, %v1471_v35  ;;  %vm314_vm1 = vcmp.eq.s32.totalorder %v1268_v16, %v1471_v35 }
  0x5b   :  { %vm1521_vm9 = vmpackc.low %vm322_vm3, %vm319_vm2  ;;  %vm309_vm3 = vcmp.eq.s32.totalorder %v1301_v19, %v1447_v33 }
  0x5c   :  { %vm949_vm5 = vmpackc.low %vm314_vm1, %vm311_vm14 }
  0x5d   :  { %920 = vmatpush1.bf16.msk.msra.mxu0 %vm919_vm11, %v1191_v17  ;;  %1025 = vmatpush3.bf16.msk.msra.mxu1 %vm1473_vm7, %v1191_v17  ;;  %vm312_vm7 = vcmp.eq.s32.totalorder %v1265_v15, %v1447_v33  ;;  %vm313_vm11 = vcmp.eq.s32.totalorder %v1265_v15, %v1455_v34 }
  0x5e   :  { %940 = vmatprep.subr.msk.bf16.mxu0 %vm939_vm13, %v1191_v17  ;;  %1030 = vmatprep.subr.msk.bf16.mxu1 %vm1497_vm0, %v1191_v17  ;;  %vm316_vm13 = vcmp.eq.s32.totalorder %v1268_v16, %v1455_v34  ;;  %vm947_vm15 = vmpackc.low %vm315_vm10, %vm312_vm7  ;;  %vm305_vm7 = vcmp.eq.s32.totalorder %v1298_v18, %v1471_v35  ;;  %vm308_vm10 = vcmp.eq.s32.totalorder %v1301_v19, %v1471_v35 }
  0x5f   :  { %vm1548_vm2 = vmpackc.low %vm316_vm13, %vm313_vm11  ;;  %vm303_vm13 = vcmp.eq.s32.totalorder %v1326_v21, %v1447_v33 }
  0x60   :  { %498 = vmatmul.mubr.bf16.vlgmr.msra.gmra.mxu0 %v1262_v14  ;;  %1027 = vmatmul.mubr.bf16.vlgmr.msra.gmra.mxu1 %v1061_v38  ;;  %vm953_vm14 = vmpackc.low %vm308_vm10, %vm305_vm7 }
  0x61   :  { %942 = vmatpush1.bf16.msk.msra.mxu0 %vm941_vm4, %v1191_v17  ;;  %1031 = vmatpush3.bf16.msk.msra.mxu1 %vm1497_vm0, %v1191_v17  ;;  %vm306_vm0 = vcmp.eq.s32.totalorder %v1298_v18, %v1447_v33  ;;  %vm307_vm4 = vcmp.eq.s32.totalorder %v1298_v18, %v1455_v34 }
  0x62   :  { %944 = vmatprep.subr.msk.bf16.mxu0 %vm943_vm6, %v1191_v17  ;;  %1032 = vmatprep.subr.msk.bf16.mxu1 %vm1521_vm9, %v1191_v17  ;;  %vm310_vm6 = vcmp.eq.s32.totalorder %v1301_v19, %v1455_v34  ;;  %vm951_vm8 = vmpackc.low %vm309_vm3, %vm306_vm0  ;;  %vm299_vm0 = vcmp.eq.s32.totalorder %v1323_v20, %v1471_v35  ;;  %vm302_vm3 = vcmp.eq.s32.totalorder %v1326_v21, %v1471_v35 }
  0x63   :  { %507 = vmatprep.mubr.bf16.mxu0 %v1190_v1  ;;  %1046 = vmatprep.mubr.bf16.mxu1 %v1529_v40  ;;  %vm1574_vm11 = vmpackc.low %vm310_vm6, %vm307_vm4  ;;  %vm297_vm6 = vcmp.eq.s32.totalorder %v1358_v24, %v1447_v33 }
  0x64   :  { %vm957_vm7 = vmpackc.low %vm302_vm3, %vm299_vm0 }
  0x65   :  { %946 = vmatpush1.bf16.msk.msra.mxu0 %vm945_vm12, %v1191_v17  ;;  %1033 = vmatpush3.bf16.msk.msra.mxu1 %vm1521_vm9, %v1191_v17  ;;  %vm300_vm9 = vcmp.eq.s32.totalorder %v1323_v20, %v1447_v33  ;;  %vm301_vm12 = vcmp.eq.s32.totalorder %v1323_v20, %v1455_v34 }
  0x66   :  { %948 = vmatprep.subr.msk.bf16.mxu0 %vm947_vm15, %v1191_v17  ;;  %1034 = vmatprep.subr.msk.bf16.mxu1 %vm1548_vm2, %v1191_v17  ;;  %vm304_vm15 = vcmp.eq.s32.totalorder %v1326_v21, %v1455_v34  ;;  %vm955_vm1 = vmpackc.low %vm303_vm13, %vm300_vm9  ;;  %vm293_vm9 = vcmp.eq.s32.totalorder %v1355_v23, %v1471_v35  ;;  %vm296_vm13 = vcmp.eq.s32.totalorder %v1358_v24, %v1471_v35 }
  0x67   :  { %vm1598_vm4 = vmpackc.low %vm304_vm15, %vm301_vm12  ;;  %vm291_vm15 = vcmp.eq.s32.totalorder %v1392_v28, %v1447_v33 }
  0x68   :  { %508 = vmatmul.mubr.bf16.gmra.mxu0 %v1061_v38  ;;  %vm961_vm0 = vmpackc.low %vm296_vm13, %vm293_vm9 }
  0x69   :  { %950 = vmatpush1.bf16.msk.msra.mxu0 %vm949_vm5, %v1191_v17  ;;  %1035 = vmatpush3.bf16.msk.msra.mxu1 %vm1548_vm2, %v1191_v17  ;;  %vm294_vm2 = vcmp.eq.s32.totalorder %v1355_v23, %v1447_v33  ;;  %vm295_vm5 = vcmp.eq.s32.totalorder %v1355_v23, %v1455_v34 }
  0x6a   :  { %952 = vmatprep.subr.msk.bf16.mxu0 %vm951_vm8, %v1191_v17  ;;  %1036 = vmatprep.subr.msk.bf16.mxu1 %vm1574_vm11, %v1191_v17  ;;  %vm298_vm8 = vcmp.eq.s32.totalorder %v1358_v24, %v1455_v34  ;;  %vm959_vm10 = vmpackc.low %vm297_vm6, %vm294_vm2  ;;  %vm287_vm2 = vcmp.eq.s32.totalorder %v1389_v27, %v1471_v35  ;;  %vm290_vm6 = vcmp.eq.s32.totalorder %v1392_v28, %v1471_v35 }
  0x6b   :  { %615 = vmatprep.mubr.bf16.mxu0 %v1190_v1  ;;  %vm1623_vm12 = vmpackc.low %vm298_vm8, %vm295_vm5  ;;  %vm282_vm8 = vcmp.eq.s32.totalorder %v1233_v2, %v1447_v33 }
  0x6c   :  { %vm965_vm9 = vmpackc.low %vm290_vm6, %vm287_vm2 }
  0x6d   :  { %954 = vmatpush1.bf16.msk.msra.mxu0 %vm953_vm14, %v1191_v17  ;;  %1037 = vmatpush3.bf16.msk.msra.mxu1 %vm1574_vm11, %v1191_v17  ;;  %vm288_vm11 = vcmp.eq.s32.totalorder %v1389_v27, %v1447_v33  ;;  %vm289_vm14 = vcmp.eq.s32.totalorder %v1389_v27, %v1455_v34 }
  0x6e   :  { %956 = vmatprep.subr.msk.bf16.mxu0 %vm955_vm1, %v1191_v17  ;;  %1038 = vmatprep.subr.msk.bf16.mxu1 %vm1598_vm4, %v1191_v17  ;;  %vm292_vm1 = vcmp.eq.s32.totalorder %v1392_v28, %v1455_v34  ;;  %vm963_vm3 = vmpackc.low %vm291_vm15, %vm288_vm11  ;;  %vm281_vm15 = vcmp.eq.s32.totalorder %v1233_v2, %v1471_v35 }
  0x6f   :  { %vm983_vm5 = vmpackc.low %vm292_vm1, %vm289_vm14  ;;  %vm284_vm14 = vcmp.eq.s32.totalorder %v1419_v30, %v1471_v35  ;;  %vm771_vm1 = vcmp.lt.s32.totalorder %v72_v0, 384 }
  0x71   :  { %958 = vmatpush1.bf16.msk.msra.mxu0 %vm957_vm7, %v1191_v17  ;;  %1039 = vmatpush3.bf16.msk.msra.mxu1 %vm1598_vm4, %v1191_v17  ;;  %vm285_vm4 = vcmp.eq.s32.totalorder %v1419_v30, %v1447_v33  ;;  %vm283_vm7 = vcmp.eq.s32.totalorder %v1233_v2, %v1455_v34 }
  0x72   :  { %960 = vmatprep.subr.msk.bf16.mxu0 %vm959_vm10, %v1191_v17  ;;  %1040 = vmatprep.subr.msk.bf16.mxu1 %vm1623_vm12, %v1191_v17  ;;  %vm286_vm10 = vcmp.eq.s32.totalorder %v1419_v30, %v1455_v34  ;;  %vm967_vm13 = vmpackc.low %vm285_vm4, %vm282_vm8 }
  0x73   :  { %vm985_vm11 = vmpackc.low %vm286_vm10, %vm283_vm7 }
  0x75   :  { %962 = vmatpush1.bf16.msk.msra.mxu0 %vm961_vm0, %v1191_v17  ;;  %1041 = vmatpush3.bf16.msk.msra.mxu1 %vm1623_vm12, %v1191_v17  ;;  %vm969_vm12 = vmpackc.low %vm284_vm14, %vm281_vm15 }
  0x76   :  { %964 = vmatprep.subr.msk.bf16.mxu0 %vm963_vm3, %v1191_v17  ;;  %1042 = vmatprep.subr.msk.bf16.mxu1 %vm983_vm5, %v1191_v17 }
  0x79   :  { %966 = vmatpush1.bf16.msk.msra.mxu0 %vm965_vm9, %v1191_v17  ;;  %1043 = vmatpush3.bf16.msk.msra.mxu1 %vm983_vm5, %v1191_v17 }
  0x7a   :  { %968 = vmatprep.subr.msk.bf16.mxu0 %vm967_vm13, %v1191_v17  ;;  %1044 = vmatprep.subr.msk.bf16.mxu1 %vm985_vm11, %v1191_v17 }
  0x7d   :  { %970 = vmatpush1.bf16.msk.msra.mxu0 %vm969_vm12, %v1191_v17  ;;  %1045 = vmatpush3.bf16.msk.msra.mxu1 %vm985_vm11, %v1191_v17 }
  0x80   :  { %616 = vmatmul.mubr.bf16.vlgmr.msra.gmra.mxu0 %v1529_v40  ;;  %1047 = vmatmul.mubr.bf16.vlgmr.msra.gmra.mxu1 %v1063_v45 }
  0x81   :  { %625 = vmatprep.mubr.bf16.mxu0 %v1190_v1 }
  0x88   :  { %626 = vmatmul.mubr.bf16.gmra.mxu0 %v1063_v45 }
 0x120   :  { %v499_v46 = vpop.f32.mrf.mxu0  ;;  %v1028_v50 = vpop.f32.mrf.mxu1 }
 0x122   :  { %v501_v47 = vpop.f32.mrf.mxu0  ;;  %v552_v52 = vpop.f32.mrf.mxu1 }
 0x124   :  { %v503_v48 = vpop.f32.mrf.mxu0  ;;  %v1029_v54 = vpop.f32.mrf.mxu1 }
 0x126   :  { %v505_v49 = vpop.f32.mrf.mxu0  ;;  %v555_v56 = vpop.f32.mrf.mxu1 }
 0x128   :  { %v509_v51 = vpop.f32.mrf.mxu0 }
 0x12a   :  { %v511_v53 = vpop.f32.mrf.mxu0 }
 0x12c   :  { %v513_v55 = vpop.f32.mrf.mxu0 }
 0x12e   :  { %v515_v57 = vpop.f32.mrf.mxu0 }
 0x140   :  { %v617_v58 = vpop.f32.mrf.mxu0  ;;  %v1048_v59 = vpop.f32.mrf.mxu1 }
 0x141   :  { %v685_v7 = vmul.f32 %v617_v58, %v499_v46  ;;  %v693_v9 = vmul.f32 %v1048_v59, %v1028_v50 }
 0x142   :  { %v619_v60 = vpop.f32.mrf.mxu0  ;;  %v670_v61 = vpop.f32.mrf.mxu1 }
 0x143   :  { %v687_v4 = vmul.f32 %v670_v61, %v552_v52  ;;  %v686_v13 = vmul.f32 %v619_v60, %v501_v47 }
 0x144   :  { %v621_v62 = vpop.f32.mrf.mxu0  ;;  %v1049_v63 = vpop.f32.mrf.mxu1 }
 0x145   :  { %v688_v5 = vmul.f32 %v621_v62, %v503_v48  ;;  %v696_v16 = vmul.f32 %v1049_v63, %v1029_v54 }
 0x146   :  { %v623_v1 = vpop.f32.mrf.mxu0  ;;  %v673_v3 = vpop.f32.mrf.mxu1 }
 0x147   :  { %v690_v6 = vmul.f32 %v673_v3, %v555_v56  ;;  %v689_v10 = vmul.f32 %v623_v1, %v505_v49  ;;  %v697_v15 = vadd.f32 %v688_v5, %v685_v7  ;;  %v1192_v56 = vmov 1966171168  }
 0x148   :  { %v627_v8 = vpop.f32.mrf.mxu0 }
 0x149   :  { %v715_v11 = vadd.f32 %v690_v6, %v687_v4  ;;  %v691_v12 = vmul.f32 %v627_v8, %v509_v51  ;;  %v706_v20 = vadd.f32 %v689_v10, %v686_v13 }
 0x14a   :  { %v629_v14 = vpop.f32.mrf.mxu0 }
 0x14b   :  { %v716_v17 = vadd.f32 %v715_v11, %v693_v9  ;;  %v692_v18 = vmul.f32 %v629_v14, %v511_v53  ;;  %v698_v22 = vadd.f32 %v697_v15, %v691_v12 }
 0x14c   :  { %v631_v19 = vpop.f32.mrf.mxu0 }
 0x14d   :  { %v717_v21 = vadd.f32 %v716_v17, %v696_v16  ;;  %v694_v23 = vmul.f32 %v631_v19, %v513_v55  ;;  %v707_v26 = vadd.f32 %v706_v20, %v692_v18 }
 0x14e   :  { %v633_v24 = vpop.f32.mrf.mxu0 }
 0x14f   :  { %v718_v25 = vrot.slane %v717_v21, 4  ;;  %v699_v27 = vadd.f32 %v698_v22, %v694_v23  ;;  %v695_v28 = vmul.f32 %v633_v24, %v515_v57  ;;  %v747_v57 = vunpack.c.l.s4 %v1192_v56 }
 0x151   :  { %v719_v29 = vadd.f32 %v718_v25, %v717_v21  ;;  %v700_v30 = vrot.slane %v699_v27, 4  ;;  %v708_v31 = vadd.f32 %v707_v26, %v695_v28  ;;  %v748_v58 = vunpack.c.0.s8 %v747_v57 }
 0x153   :  { %v720_v32 = vrot.slane %v719_v29, 2  ;;  %v701_v33 = vadd.f32 %v700_v30, %v699_v27  ;;  %v709_v34 = vrot.slane %v708_v31, 4  ;;  %v751_v61 = vsub.s32 %v748_v58, %v1233_v2 }
 0x155   :  { %v721_v35 = vadd.f32 %v720_v32, %v719_v29  ;;  %v702_v36 = vrot.slane %v701_v33, 2  ;;  %v710_v37 = vadd.f32 %v709_v34, %v708_v31 }
 0x157   :  { %v722_v38 = vrot.slane %v721_v35, 1  ;;  %v703_v39 = vadd.f32 %v702_v36, %v701_v33  ;;  %v711_v40 = vrot.slane %v710_v37, 2 }
 0x159   :  { %v723_v41 = vadd.f32 %v722_v38, %v721_v35  ;;  %v704_v42 = vrot.slane %v703_v39, 1  ;;  %v712_v43 = vadd.f32 %v711_v40, %v710_v37 }
 0x15b   :  { %v989_v44 = vmul.f32 -1.442695, %v723_v41  ;;  %v705_v45 = vadd.f32 %v704_v42, %v703_v39  ;;  %v713_v46 = vrot.slane %v712_v43, 1 }
 0x15d   :  { %1064 = vpow2.f32 %v989_v44  ;;  %v987_v47 = vmul.f32 -1.442695, %v705_v45  ;;  %v714_v48 = vadd.f32 %v713_v46, %v712_v43 }
 0x15f   :  { %1066 = vpow2.f32 %v987_v47  ;;  %v988_v49 = vmul.f32 -1.442695, %v714_v48 }
 0x161   :  { %1068 = vpow2.f32 %v988_v49 }
 0x16a   :  { %v1065_v50 = vpop.eup %1064 }
 0x16b   :  { %v735_v51 = vadd.f32 1.0, %v1065_v50 }
 0x16c   :  { %v1067_v52 = vpop.eup %1066 }
 0x16d   :  { %v733_v53 = vadd.f32 1.0, %v1067_v52  ;;  %1070 = vrcp.f32 %v735_v51 }
 0x16e   :  { %v1069_v54 = vpop.eup %1068 }
 0x16f   :  { %v734_v55 = vadd.f32 1.0, %v1069_v54  ;;  %1072 = vrcp.f32 %v733_v53 }
 0x171   :  { %1074 = vrcp.f32 %v734_v55 }
 0x17a   :  { %v1071_v59 = vpop.eup %1070 }
 0x17b   :  { %v759_v3 = vrot.slane %v1071_v59, %v751_v61 }
 0x17c   :  { %v1073_v60 = vpop.eup %1072 }
 0x17e   :  { %v1075_v62 = vpop.eup %1074 }
 0x17f   :  { %v745_v63 = vcombine.low %v1073_v60, %v1075_v62 }
 0x181   :  { %v752_v1 = vrot.slane %v745_v63, %v751_v61 }
 0x183   :  { %v760_v4 = vcombine.low %v752_v1, %v759_v3 }
 0x185   :  { %v767_v5 = vrot.slane %v760_v4, %v751_v61 }
 0x187   :  { %773 = vst.msk [vmem:[#allocation10] sm:$0x7] %vm771_vm1, %v767_v5 }
 0x188   :  { %1167 = shalt.err (!%p1164_p10)
}
 0x189   :  { %783 = dma.vmem_to_hbm [thread:$0]  %s781_s3, 48, %s1682_s4, [#allocation4]  }
 0x18a   :  { %1182 = dma.done.wait [#allocation4], 48  }
 0x18b   :  { %1183 = vsyncadd [#allocation4], 4294967248 }
 0x18c   :  { %787 = vsyncpa [#allocation3], 1 }
 0x18d   :  { %788 = vsyncpa [#allocation6], 1 }
 0x18e   :  { %789 = vsyncpa [#allocation9], 1 }
 0x18f   :  { %790 = vsyncpa [#allocation4], 1 }

</bundles_post_ra>
